<compile_context>
chip_gen: v7x
topology: tpu7x:2x2x1
jax: 0.10.0
libtpu: 0.0.40
codegen_flags: <defaults>
</compile_context>

<pallas_src>
import functools

import jax
import jax.numpy as jnp
import numpy as np
from jax import lax
from jax.experimental import pallas as pl
from jax.experimental.pallas import tpu as pltpu


def _ceil_to(x, m):
    return (x + m - 1) // m * m


def _pick_tile(hw, target=512):
    """Largest multiple of 128 that divides hw and is <= target (whole extent
    as fallback).  `target` is kept small for the toy shapes in this script;
    at production shapes 2048+ keeps the pipeline near the HBM roofline."""
    best = None
    t = 128
    while t <= min(hw, target):
        if hw % t == 0:
            best = t
        t += 128
    return best if best is not None else hw


def _up_conv_bn_relu_kernel(x_ref, w_ref, shift_ref, mask_ref, o_ref, *,
                            wo, tile, tile_w):
    """One (batch, spatial-tile) grid step.

    x_ref:     (Cin, F)      upsampled, row-padded input, flattened spatially,
                             with a 1-element front guard (F = HW + guard).
    w_ref:     (9, Cout, Cin) conv weights (tap-major, BN scale pre-folded).
    shift_ref: (Cout, 1)     folded BN shift = (conv_bias - mean)*scale + beta.
    mask_ref:  (2, TILE)     edge masks: row 0 kills column-wrap for kx=0
                             (output col 0), row 1 for kx=2 (output col Wo-1).
    o_ref:     (Cout, TILE)  flattened NCHW output tile (lane-dense).
    """
    t = pl.program_id(1)
    if tile % 128 == 0:
        base = pl.multiple_of(t * tile, 128)
    else:  # single-tile fallback: t == 0 always
        base = t * tile

    # One aligned dynamic load of the tile's input window; the 9 conv taps are
    # static lane-shifted slices of it (im2col happens in VMEM, not HBM).
    window = x_ref[:, pl.ds(base, tile_w)]                 # (Cin, tile_w)
    masks = mask_ref[...]                                  # (2, tile)
    m_left, m_right = masks[0:1, :], masks[1:2, :]

    cout = o_ref.shape[0]
    acc = jnp.zeros((cout, tile), jnp.float32)
    for kx in range(3):
        part = jnp.zeros((cout, tile), jnp.float32)
        for ky in range(3):
            off = ky * wo + kx                             # static offset
            slab = window[:, off:off + tile]               # (Cin, tile)
            part = part + jnp.dot(w_ref[3 * ky + kx], slab,
                                  preferred_element_type=jnp.float32)
        # Kill contributions that wrapped across a row boundary (these are the
        # positions where the 3x3 conv should have read zero padding).  The
        # mask is per-output-column, so it commutes with the channel reduction
        # and can be applied to the (Cout, tile) partial sum.
        if kx == 0:
            part = part * m_left
        elif kx == 2:
            part = part * m_right
        acc = acc + part

    y = acc + shift_ref[...]                               # folded BN shift
    o_ref[...] = jnp.maximum(y, 0.0).astype(o_ref.dtype)   # ReLU


def decoder_block_yb_forward(x_nchw, w_hwio, conv_bias, gamma, beta,
                             running_mean, running_var, eps=1e-5, tile=None):
    """x_nchw: (N, Cin, H, W) float32.  Returns (N, Cout, 2H, 2W) float32."""
    N, Cin, H, W = x_nchw.shape
    Cout = w_hwio.shape[-1]
    Ho, Wo = 2 * H, 2 * W
    HW = Ho * Wo

    TILE = _pick_tile(HW) if tile is None else tile
    n_tiles = HW // TILE
    guard = _ceil_to(2 * Wo + 2, 128)   # room for the largest tap shift (2*Wo+2)
    TILE_W = TILE + guard               # per-tile input window length
    F = HW + guard                      # flat, guarded input length per (n, c)

    # ---- XLA glue (single fused pass): nearest-x2 upsample, row pad, flatten,
    #      guard pad.  Stays in channel-first (NCHW) layout -> no transpose. ----
    x_up = jnp.repeat(jnp.repeat(x_nchw, 2, axis=2), 2, axis=3)    # (N,Cin,Ho,Wo)
    x_rp = jnp.pad(x_up, ((0, 0), (0, 0), (1, 1), (0, 0)))         # row pad only
    x_flat = x_rp.reshape(N, Cin, (Ho + 2) * Wo)
    back = F - (Ho + 2) * Wo - 1
    x_flat = jnp.pad(x_flat, ((0, 0), (0, 0), (1, back)))          # (N,Cin,F)

    # ---- fold BatchNorm (running stats) + conv bias; scale goes into W. ----
    scale = gamma / jnp.sqrt(running_var + eps)                    # (Cout,)
    shift = ((conv_bias - running_mean) * scale + beta).reshape(Cout, 1)
    # (3,3,Cin,Cout) -> (9, Cout, Cin), tap index k = 3*ky + kx
    w_k = (jnp.transpose(w_hwio, (0, 1, 3, 2)).reshape(9, Cout, Cin)
           * scale[None, :, None]).astype(jnp.float32)

    # ---- edge masks for the column taps (kx=0 wraps at col 0, kx=2 at Wo-1) ----
    col = jnp.arange(HW, dtype=jnp.int32) % Wo
    edge_mask = jnp.stack([(col != 0), (col != Wo - 1)]).astype(jnp.float32)

    kernel = functools.partial(_up_conv_bn_relu_kernel,
                               wo=Wo, tile=TILE, tile_w=TILE_W)

    out_flat = pl.pallas_call(
        kernel,
        out_shape=jax.ShapeDtypeStruct((N, Cout, HW), jnp.float32),
        grid_spec=pltpu.PrefetchScalarGridSpec(
            num_scalar_prefetch=0,
            grid=(N, n_tiles),
            in_specs=[
                pl.BlockSpec((None, Cin, F), lambda n, t: (n, 0, 0)),
                pl.BlockSpec((9, Cout, Cin), lambda n, t: (0, 0, 0)),
                pl.BlockSpec((Cout, 1), lambda n, t: (0, 0)),
                pl.BlockSpec((2, TILE), lambda n, t: (0, t)),
            ],
            out_specs=pl.BlockSpec((None, Cout, TILE), lambda n, t: (n, 0, t)),
        ),
        compiler_params=pltpu.CompilerParams(
            dimension_semantics=("parallel", "parallel"),
            vmem_limit_bytes=32 * 1024 * 1024,
        ),
    )(x_flat, w_k, shift, edge_mask)

    # Output is already flattened NCHW: just split the spatial dim (free).
    return out_flat.reshape(N, Cout, Ho, Wo)


def _reference(x, w_hwio, conv_bias, gamma, beta, running_mean,
               running_var, eps=1e-5):
    """Pure-JAX reference of the same forward pass (correctness check)."""
    x_up = jnp.repeat(jnp.repeat(x, 2, axis=2), 2, axis=3)
    conv = lax.conv_general_dilated(
        x_up, w_hwio, window_strides=(1, 1), padding="SAME",
        dimension_numbers=("NCHW", "HWIO", "NCHW"))
    conv = conv + conv_bias[None, :, None, None]
    y = ((conv - running_mean[None, :, None, None])
         / jnp.sqrt(running_var[None, :, None, None] + eps)
         * gamma[None, :, None, None] + beta[None, :, None, None])
    return jnp.maximum(y, 0.0)


if __name__ == "__main__":
    # Small shapes consistent with the module: N=2, ch_in=4, ch_out=8, spatial=16.
    N, Cin, Cout, H, W = 2, 4, 8, 16, 16

    key = jax.random.PRNGKey(0)
    kx, kw, kb, kg, kbeta, km, kv = jax.random.split(key, 7)

    x = jax.random.normal(kx, (N, Cin, H, W), dtype=jnp.float32)

    # Conv2d(ch_in, ch_out, 3) weights in HWIO layout, deterministic init.
    fan_in = Cin * 9
    w_hwio = jax.random.normal(kw, (3, 3, Cin, Cout), dtype=jnp.float32) / np.sqrt(fan_in)
    conv_bias = 0.1 * jax.random.normal(kb, (Cout,), dtype=jnp.float32)

    # BatchNorm2d(ch_out) parameters (inference-mode running stats).
    gamma = 1.0 + 0.1 * jax.random.normal(kg, (Cout,), dtype=jnp.float32)
    beta = 0.1 * jax.random.normal(kbeta, (Cout,), dtype=jnp.float32)
    running_mean = 0.1 * jax.random.normal(km, (Cout,), dtype=jnp.float32)
    running_var = 0.5 + jnp.abs(jax.random.normal(kv, (Cout,), dtype=jnp.float32))

    fwd = jax.jit(decoder_block_yb_forward)
    out = fwd(x, w_hwio, conv_bias, gamma, beta, running_mean, running_var)
    out = jax.block_until_ready(out)

    ref = _reference(x, w_hwio, conv_bias, gamma, beta, running_mean, running_var)
    np.testing.assert_allclose(np.asarray(out), np.asarray(ref), atol=1e-4, rtol=1e-4)

    assert out.shape == (N, Cout, 2 * H, 2 * W)
    print("KERNEL_OK")
</pallas_src>

<mosaic_0001>
module attributes {stable_mosaic.version = 11 : i64} {
  func.func @_up_conv_bn_relu_kernel(%arg0: i32, %arg1: i32, %arg2: memref<1x4x1152xf32, #tpu.memory_space<vmem>>, %arg3: memref<9x8x4xf32, #tpu.memory_space<vmem>>, %arg4: memref<8x1xf32, #tpu.memory_space<vmem>>, %arg5: memref<2x512xf32, #tpu.memory_space<vmem>>, %arg6: memref<1x8x512xf32, #tpu.memory_space<vmem>>) attributes {dimension_semantics = [#tpu.dimension_semantics<parallel>, #tpu.dimension_semantics<parallel>], iteration_bounds = array<i64: 2, 2>, scalar_prefetch = 0 : i64, scratch_operands = 0 : i64, tpu.core_type = #tpu.core_type<tc>, window_params = [{transform_indices = @transform_0, window_bounds = array<i64: 1, 4, 1152>}, {pipeline_mode = #tpu.pipeline_mode<synchronous>, transform_indices = @transform_1, window_bounds = array<i64: 9, 8, 4>}, {pipeline_mode = #tpu.pipeline_mode<synchronous>, transform_indices = @transform_2, window_bounds = array<i64: 8, 1>}, {transform_indices = @transform_3, window_bounds = array<i64: 2, 512>}, {transform_indices = @transform_4, window_bounds = array<i64: 1, 8, 512>}]} {
    %c512_i32 = arith.constant 512 : i32
    %0 = arith.muli %arg1, %c512_i32 : i32
    %1 = tpu.assume_multiple %0, 128 : i32
    %c0 = arith.constant 0 : index
    %c0_0 = arith.constant 0 : index
    %2 = arith.index_cast %1 : i32 to index
    %3 = vector.load %arg2[%c0, %c0_0, %2] : memref<1x4x1152xf32, #tpu.memory_space<vmem>>, vector<1x4x640xf32>
    %4 = vector.shape_cast %3 : vector<1x4x640xf32> to vector<4x640xf32>
    %c0_1 = arith.constant 0 : index
    %c0_2 = arith.constant 0 : index
    %5 = vector.load %arg5[%c0_1, %c0_2] : memref<2x512xf32, #tpu.memory_space<vmem>>, vector<2x512xf32>
    %6 = vector.extract_strided_slice %5 {offsets = [0, 0], sizes = [1, 512], strides = [1, 1]} : vector<2x512xf32> to vector<1x512xf32>
    %7 = vector.extract_strided_slice %5 {offsets = [1, 0], sizes = [1, 512], strides = [1, 1]} : vector<2x512xf32> to vector<1x512xf32>
    %cst = arith.constant 0.000000e+00 : f32
    %8 = vector.broadcast %cst : f32 to vector<8x512xf32>
    %cst_3 = arith.constant 0.000000e+00 : f32
    %9 = vector.broadcast %cst_3 : f32 to vector<8x512xf32>
    %10 = vector.extract_strided_slice %4 {offsets = [0, 0], sizes = [4, 512], strides = [1, 1]} : vector<4x640xf32> to vector<4x512xf32>
    %c0_4 = arith.constant 0 : index
    %c0_5 = arith.constant 0 : index
    %c0_6 = arith.constant 0 : index
    %11 = vector.load %arg3[%c0_4, %c0_5, %c0_6] : memref<9x8x4xf32, #tpu.memory_space<vmem>>, vector<1x8x4xf32>
    %12 = vector.shape_cast %11 : vector<1x8x4xf32> to vector<8x4xf32>
    %cst_7 = arith.constant dense<0.000000e+00> : vector<8x512xf32>
    %13 = tpu.matmul %12, %10, %cst_7 {dimension_numbers = #tpu.dot_dimension_numbers<[1], [0], [0], [1], [0, 0, 1, 1], [], []>} : vector<8x4xf32>, vector<4x512xf32>, vector<8x512xf32> -> vector<8x512xf32>
    %14 = arith.addf %9, %13 : vector<8x512xf32>
    %15 = vector.extract_strided_slice %4 {offsets = [0, 32], sizes = [4, 512], strides = [1, 1]} : vector<4x640xf32> to vector<4x512xf32>
    %c3 = arith.constant 3 : index
    %c0_8 = arith.constant 0 : index
    %c0_9 = arith.constant 0 : index
    %16 = vector.load %arg3[%c3, %c0_8, %c0_9] : memref<9x8x4xf32, #tpu.memory_space<vmem>>, vector<1x8x4xf32>
    %17 = vector.shape_cast %16 : vector<1x8x4xf32> to vector<8x4xf32>
    %cst_10 = arith.constant dense<0.000000e+00> : vector<8x512xf32>
    %18 = tpu.matmul %17, %15, %cst_10 {dimension_numbers = #tpu.dot_dimension_numbers<[1], [0], [0], [1], [0, 0, 1, 1], [], []>} : vector<8x4xf32>, vector<4x512xf32>, vector<8x512xf32> -> vector<8x512xf32>
    %19 = arith.addf %14, %18 : vector<8x512xf32>
    %20 = vector.extract_strided_slice %4 {offsets = [0, 64], sizes = [4, 512], strides = [1, 1]} : vector<4x640xf32> to vector<4x512xf32>
    %c6 = arith.constant 6 : index
    %c0_11 = arith.constant 0 : index
    %c0_12 = arith.constant 0 : index
    %21 = vector.load %arg3[%c6, %c0_11, %c0_12] : memref<9x8x4xf32, #tpu.memory_space<vmem>>, vector<1x8x4xf32>
    %22 = vector.shape_cast %21 : vector<1x8x4xf32> to vector<8x4xf32>
    %cst_13 = arith.constant dense<0.000000e+00> : vector<8x512xf32>
    %23 = tpu.matmul %22, %20, %cst_13 {dimension_numbers = #tpu.dot_dimension_numbers<[1], [0], [0], [1], [0, 0, 1, 1], [], []>} : vector<8x4xf32>, vector<4x512xf32>, vector<8x512xf32> -> vector<8x512xf32>
    %24 = arith.addf %19, %23 : vector<8x512xf32>
    %25 = vector.broadcast %6 : vector<1x512xf32> to vector<8x512xf32>
    %26 = arith.mulf %24, %25 : vector<8x512xf32>
    %27 = arith.addf %8, %26 : vector<8x512xf32>
    %cst_14 = arith.constant 0.000000e+00 : f32
    %28 = vector.broadcast %cst_14 : f32 to vector<8x512xf32>
    %29 = vector.extract_strided_slice %4 {offsets = [0, 1], sizes = [4, 512], strides = [1, 1]} : vector<4x640xf32> to vector<4x512xf32>
    %c1 = arith.constant 1 : index
    %c0_15 = arith.constant 0 : index
    %c0_16 = arith.constant 0 : index
    %30 = vector.load %arg3[%c1, %c0_15, %c0_16] : memref<9x8x4xf32, #tpu.memory_space<vmem>>, vector<1x8x4xf32>
    %31 = vector.shape_cast %30 : vector<1x8x4xf32> to vector<8x4xf32>
    %cst_17 = arith.constant dense<0.000000e+00> : vector<8x512xf32>
    %32 = tpu.matmul %31, %29, %cst_17 {dimension_numbers = #tpu.dot_dimension_numbers<[1], [0], [0], [1], [0, 0, 1, 1], [], []>} : vector<8x4xf32>, vector<4x512xf32>, vector<8x512xf32> -> vector<8x512xf32>
    %33 = arith.addf %28, %32 : vector<8x512xf32>
    %34 = vector.extract_strided_slice %4 {offsets = [0, 33], sizes = [4, 512], strides = [1, 1]} : vector<4x640xf32> to vector<4x512xf32>
    %c4 = arith.constant 4 : index
    %c0_18 = arith.constant 0 : index
    %c0_19 = arith.constant 0 : index
    %35 = vector.load %arg3[%c4, %c0_18, %c0_19] : memref<9x8x4xf32, #tpu.memory_space<vmem>>, vector<1x8x4xf32>
    %36 = vector.shape_cast %35 : vector<1x8x4xf32> to vector<8x4xf32>
    %cst_20 = arith.constant dense<0.000000e+00> : vector<8x512xf32>
    %37 = tpu.matmul %36, %34, %cst_20 {dimension_numbers = #tpu.dot_dimension_numbers<[1], [0], [0], [1], [0, 0, 1, 1], [], []>} : vector<8x4xf32>, vector<4x512xf32>, vector<8x512xf32> -> vector<8x512xf32>
    %38 = arith.addf %33, %37 : vector<8x512xf32>
    %39 = vector.extract_strided_slice %4 {offsets = [0, 65], sizes = [4, 512], strides = [1, 1]} : vector<4x640xf32> to vector<4x512xf32>
    %c7 = arith.constant 7 : index
    %c0_21 = arith.constant 0 : index
    %c0_22 = arith.constant 0 : index
    %40 = vector.load %arg3[%c7, %c0_21, %c0_22] : memref<9x8x4xf32, #tpu.memory_space<vmem>>, vector<1x8x4xf32>
    %41 = vector.shape_cast %40 : vector<1x8x4xf32> to vector<8x4xf32>
    %cst_23 = arith.constant dense<0.000000e+00> : vector<8x512xf32>
    %42 = tpu.matmul %41, %39, %cst_23 {dimension_numbers = #tpu.dot_dimension_numbers<[1], [0], [0], [1], [0, 0, 1, 1], [], []>} : vector<8x4xf32>, vector<4x512xf32>, vector<8x512xf32> -> vector<8x512xf32>
    %43 = arith.addf %38, %42 : vector<8x512xf32>
    %44 = arith.addf %27, %43 : vector<8x512xf32>
    %cst_24 = arith.constant 0.000000e+00 : f32
    %45 = vector.broadcast %cst_24 : f32 to vector<8x512xf32>
    %46 = vector.extract_strided_slice %4 {offsets = [0, 2], sizes = [4, 512], strides = [1, 1]} : vector<4x640xf32> to vector<4x512xf32>
    %c2 = arith.constant 2 : index
    %c0_25 = arith.constant 0 : index
    %c0_26 = arith.constant 0 : index
    %47 = vector.load %arg3[%c2, %c0_25, %c0_26] : memref<9x8x4xf32, #tpu.memory_space<vmem>>, vector<1x8x4xf32>
    %48 = vector.shape_cast %47 : vector<1x8x4xf32> to vector<8x4xf32>
    %cst_27 = arith.constant dense<0.000000e+00> : vector<8x512xf32>
    %49 = tpu.matmul %48, %46, %cst_27 {dimension_numbers = #tpu.dot_dimension_numbers<[1], [0], [0], [1], [0, 0, 1, 1], [], []>} : vector<8x4xf32>, vector<4x512xf32>, vector<8x512xf32> -> vector<8x512xf32>
    %50 = arith.addf %45, %49 : vector<8x512xf32>
    %51 = vector.extract_strided_slice %4 {offsets = [0, 34], sizes = [4, 512], strides = [1, 1]} : vector<4x640xf32> to vector<4x512xf32>
    %c5 = arith.constant 5 : index
    %c0_28 = arith.constant 0 : index
    %c0_29 = arith.constant 0 : index
    %52 = vector.load %arg3[%c5, %c0_28, %c0_29] : memref<9x8x4xf32, #tpu.memory_space<vmem>>, vector<1x8x4xf32>
    %53 = vector.shape_cast %52 : vector<1x8x4xf32> to vector<8x4xf32>
    %cst_30 = arith.constant dense<0.000000e+00> : vector<8x512xf32>
    %54 = tpu.matmul %53, %51, %cst_30 {dimension_numbers = #tpu.dot_dimension_numbers<[1], [0], [0], [1], [0, 0, 1, 1], [], []>} : vector<8x4xf32>, vector<4x512xf32>, vector<8x512xf32> -> vector<8x512xf32>
    %55 = arith.addf %50, %54 : vector<8x512xf32>
    %56 = vector.extract_strided_slice %4 {offsets = [0, 66], sizes = [4, 512], strides = [1, 1]} : vector<4x640xf32> to vector<4x512xf32>
    %c8 = arith.constant 8 : index
    %c0_31 = arith.constant 0 : index
    %c0_32 = arith.constant 0 : index
    %57 = vector.load %arg3[%c8, %c0_31, %c0_32] : memref<9x8x4xf32, #tpu.memory_space<vmem>>, vector<1x8x4xf32>
    %58 = vector.shape_cast %57 : vector<1x8x4xf32> to vector<8x4xf32>
    %cst_33 = arith.constant dense<0.000000e+00> : vector<8x512xf32>
    %59 = tpu.matmul %58, %56, %cst_33 {dimension_numbers = #tpu.dot_dimension_numbers<[1], [0], [0], [1], [0, 0, 1, 1], [], []>} : vector<8x4xf32>, vector<4x512xf32>, vector<8x512xf32> -> vector<8x512xf32>
    %60 = arith.addf %55, %59 : vector<8x512xf32>
    %61 = vector.broadcast %7 : vector<1x512xf32> to vector<8x512xf32>
    %62 = arith.mulf %60, %61 : vector<8x512xf32>
    %63 = arith.addf %44, %62 : vector<8x512xf32>
    %c0_34 = arith.constant 0 : index
    %c0_35 = arith.constant 0 : index
    %64 = vector.load %arg4[%c0_34, %c0_35] : memref<8x1xf32, #tpu.memory_space<vmem>>, vector<8x1xf32>
    %65 = vector.broadcast %64 : vector<8x1xf32> to vector<8x512xf32>
    %66 = arith.addf %63, %65 : vector<8x512xf32>
    %cst_36 = arith.constant 0.000000e+00 : f32
    %67 = vector.broadcast %cst_36 : f32 to vector<8x512xf32>
    %68 = arith.maximumf %66, %67 : vector<8x512xf32>
    %c0_37 = arith.constant 0 : index
    %c0_38 = arith.constant 0 : index
    %c0_39 = arith.constant 0 : index
    %69 = vector.load %arg6[%c0_37, %c0_38, %c0_39] : memref<1x8x512xf32, #tpu.memory_space<vmem>>, vector<1x8x512xf32>
    %70 = vector.shape_cast %69 : vector<1x8x512xf32> to vector<8x512xf32>
    %71 = vector.shape_cast %68 : vector<8x512xf32> to vector<1x8x512xf32>
    tpu.vector_store %arg6[%c0_37, %c0_38, %c0_39], %71 {strides = array<i32>} : memref<1x8x512xf32, #tpu.memory_space<vmem>>, vector<1x8x512xf32>,
    return
  }
  func.func @transform_0(%arg0: i32, %arg1: i32) -> (i32, i32, i32) {
    %c0_i32 = arith.constant 0 : i32
    %c0_i32_0 = arith.constant 0 : i32
    %c0_i32_1 = arith.constant 0 : i32
    return %arg0, %c0_i32, %c0_i32_0 : i32, i32, i32
  }
  func.func @transform_1(%arg0: i32, %arg1: i32) -> (i32, i32, i32) {
    %c0_i32 = arith.constant 0 : i32
    %c0_i32_0 = arith.constant 0 : i32
    %c0_i32_1 = arith.constant 0 : i32
    %c0_i32_2 = arith.constant 0 : i32
    return %c0_i32, %c0_i32_0, %c0_i32_1 : i32, i32, i32
  }
  func.func @transform_2(%arg0: i32, %arg1: i32) -> (i32, i32) {
    %c0_i32 = arith.constant 0 : i32
    %c0_i32_0 = arith.constant 0 : i32
    %c0_i32_1 = arith.constant 0 : i32
    return %c0_i32, %c0_i32_0 : i32, i32
  }
  func.func @transform_3(%arg0: i32, %arg1: i32) -> (i32, i32) {
    %c0_i32 = arith.constant 0 : i32
    %c0_i32_0 = arith.constant 0 : i32
    return %c0_i32, %arg1 : i32, i32
  }
  func.func @transform_4(%arg0: i32, %arg1: i32) -> (i32, i32, i32) {
    %c0_i32 = arith.constant 0 : i32
    %c0_i32_0 = arith.constant 0 : i32
    return %arg0, %c0_i32, %arg1 : i32, i32, i32
  }
}

</mosaic_0001>

<bundles_post_ra>
// kernel: decoder_block_yb_forward.1
= control target key start
LH: loop header
LB: loop body
LE: loop exit
PB: predicated region body
PF: predicated region fallthrough
CT: control target
= control target key end

     0   :  { %s2224_s15 = smov 0   ;;  %s2226_s16 = smov 0   ;;  %s2456_s0 = inlined_call_operand.vmem [shape: f32[2,4,1152], index: 0, kind: input, shape index: {}]   ;;  %s2457_s1 = inlined_call_operand.vmem [shape: f32[9,8,4], index: 1, kind: input, shape index: {}]   ;;  %s2458_s2 = inlined_call_operand.vmem [shape: f32[8,1], index: 2, kind: input, shape index: {}]   ;;  %s2459_s3 = inlined_call_operand.vmem [shape: f32[2,1024], index: 3, kind: input, shape index: {}]   ;;  %s2460_s4 = inlined_call_operand.vmem [shape: f32[2,8,1024], index: 4, kind: output, shape index: {}]  }
   0x1   :  { %s2228_s17 = smov 0   ;;  %s2230_s18 = smov 0  }
   0x2   :  { %s2232_s19 = smov 0  }
   0x3 LB: > { %s23_s20 = sadd.s32 1, %s2179_s17  ;;  %s26_s21 = sadd.s32 1, %s2183_s18  ;;  %s2187_s19 = sphi %s2232_s19, %s14_s19   ;;  %s2183_s18 = sphi %s2230_s18, %s2464_s18   ;;  %s2179_s17 = sphi %s2228_s17, %s2463_s17   ;;  %s2175_s16 = sphi %s2226_s16, %s2462_s16   ;;  %s2171_s15 = sphi %s2224_s15, %s2461_s15  }
   0x4   : > { %p24_p0 = scmp.ge.s32.totalorder %s23_s20, 2  ;;  %p1998_p1 = scmp.ge.s32.totalorder %s2187_s19, 1 }
   0x5   : > { %p187_p2 = scmp.lt.s32.totalorder %s2187_s19, 5 }
   0x6   : > { %s2466_s20 = smov (%p24_p0, %s23_s20), 0  ;;  %s2468_s21 = smov (!%p24_p0, %s26_s21), %s2183_s18 }
   0x7   : > { %p188_p3 = pnand %p1998_p1, %p187_p2  ;;  %p28_p4 = scmp.ge.s32.totalorder %s2468_s21, 2 }
   0x8   : > { %p222_p5 = scmp.lt.s32.totalorder (!%p188_p3), %s2175_s16, 1  ;;  %s2005_s22 = sshll.u32 (!%p188_p3), %s2171_s15, 9  ;;  %v2189_v0 = vmov (!%p188_p3), 0.0   ;;  %v2197_v6 = vmov (!%p188_p3), 0   ;;  %v1878_v7 = vld [vmem:[%s2458_s2] sm:$0xff] (!%p188_p3)  ;;  %vm270_vm0 = vcmask (!%p188_p3), 785408  }
   0x9   : > { %s2470_s21 = smov (%p28_p4, %s2468_s21), 0  ;;  %191 = sbr.rel (%p188_p3) target bundleno = 438 (0x1b6), region = 36 }
   0xa   : > { %s244_s23 = sshra.s32 (!%p188_p3), %s2005_s22, 7  ;;  %423 = vmatprep.mubr.f32.mxu1 (!%p188_p3), %v2189_v0  ;;  %352 = vmatprep.mubr.f32.mxu0 (!%p188_p3), %v2189_v0  ;;  %s2190_s30 = smov (!%p188_p3), 96   ;;  %vm279_vm1 = vcmask (!%p188_p3), 1043456   ;;  %v2007_v14 = vld [vmem:[%s2457_s1 + $0x18] sm:$0xff] (!%p188_p3)  ;;  %vm275_vm2 = vcmask (!%p188_p3), 31744   ;;  %vm595_vm3 = vcmask (!%p188_p3), 523264  }
   0xb   : > { %s2006_s25 = sshll.u32 (!%p188_p3), %s244_s23, 2  ;;  %s2191_s5 = smov (!%p188_p3), 64   ;;  %2146 = vset.pattern.permute.xlu0 (!%p188_p3), %v2197_v6  ;;  %v252_v22 = vld [vmem:[%s2457_s1] sm:$0xff] (!%p188_p3)  ;;  %vm816_vm4 = vcmask (!%p188_p3), 777216   ;;  %v2020_v31 = vld [vmem:[%s2457_s1 + $0x30] sm:$0xff] (!%p188_p3)  ;;  %vm984_vm5 = vcmask (!%p188_p3), 1039360  }
   0xc   : > { %s2192_s6 = smov (!%p188_p3), 95   ;;  %s2193_s7 = smov (!%p188_p3), 127   ;;  %v2028_v36 = vld [vmem:[%s2457_s1 + $0x20] sm:$0xff] (!%p188_p3)  ;;  %v2027_v47 = vld [vmem:[%s2457_s1 + $0x8] sm:$0xff] (!%p188_p3)  ;;  %vm1154_vm6 = vcmask (!%p188_p3), 515072   ;;  %v2041_v56 = vld [vmem:[%s2457_s1 + $0x38] sm:$0xff] (!%p188_p3) }
   0xd   : > { %s2194_s8 = smov (!%p188_p3), 63   ;;  %s2195_s9 = smov (!%p188_p3), 94   ;;  %vm1334_vm7 = vcmask (!%p188_p3), 769024   ;;  %vm1502_vm8 = vcmask (!%p188_p3), 1031168   ;;  %vm1672_vm9 = vcmask (!%p188_p3), 506880  }
   0xe   : > { %s2196_s10 = smov (!%p188_p3), 126   ;;  %s2198_s11 = smov (!%p188_p3), 62  }
   0xf   : > { %s2000_s13 = sshll.u32 (!%p188_p3), %s2171_s15, 2 }
  0x10   : > { %s2472_s16 = smov (!%p222_p5, %s2175_s16), 1  ;;  %p228_p6 = scmp.lt.s32.totalorder %s2000_s13, 7 }
  0x11   : > { %s2095_s24 = smul.u32 36, %s2472_s16  ;;  %s2003_s15 = sshll.u32 %s2472_s16, 3 }
  0x12   : > { %s2474_s13 = smov (!%p228_p6, %s2000_s13), 7 }
  0x13   : > { %s226_s28 = scalar_lea.vmem %s2456_s0, %s2095_s24  ;;  %s2001_s14 = sshll.u32 %s2474_s13, 1 }
  0x14   : > { %s247_s29 = scalar_lea.vmem %s226_s28, %s2006_s25  ;;  %s231_s24 = scalar_lea.vmem %s2459_s3, %s2001_s14 }
  0x15   : > { %v250_v1 = vld [vmem:[%s247_s29 + $0x10] sm:$0xf]  ;;  %v2265_v2 = vld [vmem:[%s247_s29 + $0x8] sm:$0xff]  ;;  %v2272_v4 = vld [vmem:[%s247_s29] sm:$0xff]  ;;  %s239_s25 = sadd.s32 %s2003_s15, %s2474_s13 }
  0x16   : > { %268 = vrot.lane.b32.xlu1 %v250_v1, %s2190_s30  ;;  %264 = vrot.lane.b32.xlu0 %v2265_v2, %s2190_s30  ;;  %v2270_v3 = vcombine.high %v2265_v2, %v2265_v2  ;;  %v2278_v5 = vcombine.high %v2272_v4, %v2272_v4  ;;  %s2004_s26 = sshll.u32 %s239_s25, 3 }
  0x17   : > { %s241_s28 = scalar_lea.vmem %s2460_s4, %s2004_s26 }
  0x1a   : > { %266 = vrot.lane.b32.xlu1 %v2270_v3, %s2190_s30  ;;  %260 = vrot.lane.b32.xlu0 %v2272_v4, %s2190_s30 }
  0x1e   : > { %587 = vrot.lane.b32.xlu1 %v2278_v5, %s2191_s5  ;;  %262 = vrot.lane.b32.xlu0 %v2278_v5, %s2190_s30 }
  0x22   : > { %591 = vrot.lane.b32.xlu1 %v2270_v3, %s2191_s5  ;;  %589 = vrot.lane.b32.xlu0 %v2265_v2, %s2191_s5 }
  0x26   : > { %585 = vrot.lane.b32.xlu1 %v2272_v4, %s2191_s5  ;;  %593 = vrot.lane.b32.xlu0 %v250_v1, %s2191_s5 }
  0x2a   : > { %810 = vrot.lane.b32.xlu1 %v2265_v2, %s2192_s6  ;;  %808 = vrot.lane.b32.xlu0 %v2278_v5, %s2192_s6 }
  0x2e   : > { %814 = vrot.lane.b32.xlu1 %v250_v1, %s2192_s6  ;;  %812 = vrot.lane.b32.xlu0 %v2270_v3, %s2192_s6 }
  0x32   : > { %976 = vrot.lane.b32.xlu1 %v2278_v5, %s2193_s7  ;;  %806 = vrot.lane.b32.xlu0 %v2272_v4, %s2192_s6 }
  0x36   : > { %980 = vrot.lane.b32.xlu1 %v2270_v3, %s2193_s7  ;;  %978 = vrot.lane.b32.xlu0 %v2265_v2, %s2193_s7 }
  0x3a   : > { %974 = vrot.lane.b32.xlu1 %v2272_v4, %s2193_s7  ;;  %982 = vrot.lane.b32.xlu0 %v250_v1, %s2193_s7 }
  0x3e   : > { %1148 = vrot.lane.b32.xlu1 %v2265_v2, %s2194_s8  ;;  %1146 = vrot.lane.b32.xlu0 %v2278_v5, %s2194_s8 }
  0x42   : > { %1152 = vrot.lane.b32.xlu1 %v250_v1, %s2194_s8  ;;  %1150 = vrot.lane.b32.xlu0 %v2270_v3, %s2194_s8 }
  0x46   : > { %1326 = vrot.lane.b32.xlu1 %v2278_v5, %s2195_s9  ;;  %1144 = vrot.lane.b32.xlu0 %v2272_v4, %s2194_s8 }
  0x4a   : > { %1330 = vrot.lane.b32.xlu1 %v2270_v3, %s2195_s9  ;;  %1328 = vrot.lane.b32.xlu0 %v2265_v2, %s2195_s9 }
  0x4e   : > { %1324 = vrot.lane.b32.xlu1 %v2272_v4, %s2195_s9  ;;  %1332 = vrot.lane.b32.xlu0 %v250_v1, %s2195_s9 }
  0x52   : > { %1496 = vrot.lane.b32.xlu1 %v2265_v2, %s2196_s10  ;;  %1494 = vrot.lane.b32.xlu0 %v2278_v5, %s2196_s10 }
  0x56   : > { %1500 = vrot.lane.b32.xlu1 %v250_v1, %s2196_s10  ;;  %1498 = vrot.lane.b32.xlu0 %v2270_v3, %s2196_s10 }
  0x5a   : > { %1664 = vrot.lane.b32.xlu1 %v2278_v5, %s2198_s11  ;;  %1492 = vrot.lane.b32.xlu0 %v2272_v4, %s2196_s10 }
  0x5e   : > { %1668 = vrot.lane.b32.xlu1 %v2270_v3, %s2198_s11  ;;  %1666 = vrot.lane.b32.xlu0 %v2265_v2, %s2198_s11 }
  0x62   : > { %1662 = vrot.lane.b32.xlu1 %v2272_v4, %s2198_s11  ;;  %1670 = vrot.lane.b32.xlu0 %v250_v1, %s2198_s11 }
  0x66   : > { %1881 = vperm.xlu0 %2146, %v1878_v7  }
  0x88   : > { %v269_v8 = vpop.permute.xlu1 %268  ;;  %v265_v9 = vpop.permute.xlu0 %264 }
  0x8c   : > { %v267_v10 = vpop.permute.xlu1 %266  ;;  %v261_v11 = vpop.permute.xlu0 %260 }
  0x8d   : > { %v274_v12 = vsel %vm270_vm0, %v267_v10, %v269_v8  ;;  %v273_v13 = vsel %vm270_vm0, %v265_v9, %v267_v10 }
  0x8e   : > { %2011 = vmatprep.subr.msk.mxu1 %vm279_vm1, %v274_v12 }
  0x8f   : > { %2012 = vmatpush1.msk.msra.mxu1 %vm279_vm1, %v273_v13  ;;  %v2048_v13 = vld [vmem:[%s2457_s1 + $0x10] sm:$0xff] }
  0x90   : > { %v588_v15 = vpop.permute.xlu1 %587  ;;  %v263_v16 = vpop.permute.xlu0 %262  ;;  %2013 = vmatmul.mubr.msk.f32.vlgmr.msra.gmra.mrb[0].mxu1 %vm275_vm2, %v2007_v14  ;;  %2017 = vmatprep.subr.msk.mxu1 %vm279_vm1, %v2270_v3 }
  0x91   : > { %v272_v17 = vsel %vm270_vm0, %v263_v16, %v265_v9  ;;  %v271_v18 = vsel %vm270_vm0, %v261_v11, %v263_v16  ;;  %2018 = vmatpush1.msk.msra.mxu1 %vm279_vm1, %v2265_v2  ;;  %576 = vmatprep.mubr.f32.mxu1 %v2189_v0  ;;  %v2049_v2 = vld [vmem:[%s2457_s1 + $0x28] sm:$0xff] }
  0x92   : > { %2008 = vmatprep.subr.msk.mxu0 %vm279_vm1, %v272_v17 }
  0x93   : > { %2009 = vmatpush1.msk.msra.mxu0 %vm279_vm1, %v271_v18 }
  0x94   : > { %v592_v19 = vpop.permute.xlu1 %591  ;;  %2010 = vmatmul.mubr.msk.f32.vlgmr.msra.gmra.mrb[0].mxu0 %vm275_vm2, %v2007_v14  ;;  %2014 = vmatprep.subr.msk.mxu0 %vm279_vm1, %v2278_v5  ;;  %v590_v20 = vpop.permute.xlu0 %589 }
  0x95   : > { %v597_v21 = vsel %vm595_vm3, %v588_v15, %v590_v20  ;;  %2015 = vmatpush1.msk.msra.mxu0 %vm279_vm1, %v2272_v4  ;;  %505 = vmatprep.mubr.f32.mxu0 %v2189_v0  ;;  %v598_v26 = vsel %vm595_vm3, %v590_v20, %v592_v19 }
  0x96   : > { %2021 = vmatprep.subr.msk.mxu0 %vm279_vm1, %v597_v21 }
  0x98   : > { %v586_v23 = vpop.permute.xlu1 %585  ;;  %v594_v24 = vpop.permute.xlu0 %593  ;;  %2019 = vmatmul.mubr.msk.f32.vlgmr.msra.gmra.mrb[0].mxu1 %vm275_vm2, %v252_v22 }
  0x99   : > { %v599_v25 = vsel %vm595_vm3, %v592_v19, %v594_v24  ;;  %746 = vmatprep.mubr.f32.mxu1 %v2189_v0  ;;  %v596_v27 = vsel %vm595_vm3, %v586_v23, %v588_v15 }
  0x9a   : > { %2024 = vmatprep.subr.msk.mxu1 %vm279_vm1, %v599_v25 }
  0x9b   : > { %2025 = vmatpush1.msk.msra.mxu1 %vm279_vm1, %v598_v26 }
  0x9c   : > { %v811_v28 = vpop.permute.xlu1 %810  ;;  %2016 = vmatmul.mubr.msk.f32.vlgmr.msra.gmra.mrb[0].mxu0 %vm275_vm2, %v252_v22  ;;  %v809_v29 = vpop.permute.xlu0 %808  ;;  %v2062_v22 = vld [vmem:[%s2457_s1 + $0x40] sm:$0xff] }
  0x9d   : > { %2022 = vmatpush1.msk.msra.mxu0 %vm279_vm1, %v596_v27  ;;  %v818_v30 = vsel %vm816_vm4, %v809_v29, %v811_v28  ;;  %675 = vmatprep.mubr.f32.mxu0 %v2189_v0  ;;  %v758_v27 = vlaneseq }
  0x9e   : > { %2029 = vmatprep.subr.msk.mxu0 %vm279_vm1, %v818_v30 }
  0x9f   : > { %v759_v30 = vshrl.u32 %v758_v27, 7 }
  0xa0   : > { %v815_v32 = vpop.permute.xlu1 %814  ;;  %v813_v33 = vpop.permute.xlu0 %812  ;;  %2026 = vmatmul.mubr.msk.f32.vlgmr.msra.gmra.mrb[0].mxu1 %vm275_vm2, %v2020_v31 }
  0xa1   : > { %v819_v34 = vsel %vm816_vm4, %v811_v28, %v813_v33  ;;  %v820_v35 = vsel %vm816_vm4, %v813_v33, %v815_v32  ;;  %967 = vmatprep.mubr.f32.mxu1 %v2189_v0  ;;  %v251_v32 = vld [vmem:[%s231_s24] sm:$0xff]  ;;  %v772_v33 = vsub.s32 6, %v759_v30 }
  0xa2   : > { %2032 = vmatprep.subr.msk.mxu1 %vm279_vm1, %v820_v35 }
  0xa3   : > { %2033 = vmatpush1.msk.msra.mxu1 %vm279_vm1, %v819_v34  ;;  %v760_v34 = vsub.s32 0, %v759_v30 }
  0xa4   : > { %v977_v37 = vpop.permute.xlu1 %976  ;;  %v807_v38 = vpop.permute.xlu0 %806  ;;  %2023 = vmatmul.mubr.msk.f32.vlgmr.msra.gmra.mrb[0].mxu0 %vm275_vm2, %v2020_v31  ;;  %2034 = vmatmul.mubr.msk.f32.vlgmr.msra.gmra.mrb[2].mxu1 %vm275_vm2, %v2028_v36  ;;  %v768_v31 = vsub.s32 4, %v759_v30 }
  0xa5   : > { %v817_v39 = vsel %vm816_vm4, %v807_v38, %v809_v29  ;;  %896 = vmatprep.mubr.f32.mxu0 %v2189_v0  ;;  %1135 = vmatprep.mubr.f32.mxu1 %v2189_v0  ;;  %v761_v38 = vrot.slane %v251_v32, %v760_v34 }
  0xa6   : > { %2030 = vmatpush1.msk.msra.mxu0 %vm279_vm1, %v817_v39  ;;  %v769_v35 = vrot.slane %v251_v32, %v768_v31 }
  0xa8   : > { %v981_v40 = vpop.permute.xlu1 %980  ;;  %v979_v41 = vpop.permute.xlu0 %978  ;;  %2031 = vmatmul.mubr.msk.f32.vlgmr.msra.gmra.mrb[2].mxu0 %vm275_vm2, %v2028_v36  ;;  %v764_v36 = vsub.s32 2, %v759_v30  ;;  %v789_v39 = vrot.slane %v769_v35, %v760_v34 }
  0xa9   : > { %v986_v42 = vsel %vm984_vm5, %v977_v37, %v979_v41  ;;  %1064 = vmatprep.mubr.f32.mxu0 %v2189_v0  ;;  %v987_v48 = vsel %vm984_vm5, %v979_v41, %v981_v40 }
  0xaa   : > { %2035 = vmatprep.subr.msk.mxu0 %vm279_vm1, %v986_v42  ;;  %v781_v42 = vrot.slane %v761_v38, %v760_v34 }
  0xac   : > { %v975_v43 = vpop.permute.xlu1 %974  ;;  %v983_v44 = vpop.permute.xlu0 %982 }
  0xad   : > { %v985_v45 = vsel %vm984_vm5, %v975_v43, %v977_v37  ;;  %v988_v46 = vsel %vm984_vm5, %v981_v40, %v983_v44  ;;  %v773_v37 = vrot.slane %v251_v32, %v772_v33  ;;  %v765_v40 = vrot.slane %v251_v32, %v764_v36 }
  0xae   : > { %2036 = vmatpush1.msk.msra.mxu0 %vm279_vm1, %v985_v45  ;;  %2038 = vmatprep.subr.msk.mxu1 %vm279_vm1, %v988_v46 }
  0xaf   : > { %2039 = vmatpush1.msk.msra.mxu1 %vm279_vm1, %v987_v48  ;;  %v793_v41 = vrot.slane %v773_v37, %v760_v34  ;;  %v785_v44 = vrot.slane %v765_v40, %v760_v34 }
  0xb0   : > { %v1149_v49 = vpop.permute.xlu1 %1148  ;;  %2040 = vmatmul.mubr.msk.f32.vlgmr.msra.gmra.mrb[2].mxu1 %vm275_vm2, %v2027_v47  ;;  %v1147_v50 = vpop.permute.xlu0 %1146  ;;  %2037 = vmatmul.mubr.msk.f32.vlgmr.msra.gmra.mrb[2].mxu0 %vm275_vm2, %v2027_v47 }
  0xb1   : > { %v1156_v51 = vsel %vm1154_vm6, %v1147_v50, %v1149_v49  ;;  %1305 = vmatprep.mubr.f32.mxu1 %v2189_v0  ;;  %1234 = vmatprep.mubr.f32.mxu0 %v2189_v0 }
  0xb2   : > { %2042 = vmatprep.subr.msk.mxu0 %vm279_vm1, %v1156_v51 }
  0xb4   : > { %v1153_v52 = vpop.permute.xlu1 %1152  ;;  %v1151_v53 = vpop.permute.xlu0 %1150 }
  0xb5   : > { %v1157_v54 = vsel %vm1154_vm6, %v1149_v49, %v1151_v53  ;;  %v1158_v55 = vsel %vm1154_vm6, %v1151_v53, %v1153_v52 }
  0xb6   : > { %2045 = vmatprep.subr.msk.mxu1 %vm279_vm1, %v1158_v55 }
  0xb7   : > { %2046 = vmatpush1.msk.msra.mxu1 %vm279_vm1, %v1157_v54 }
  0xb8   : > { %v1327_v57 = vpop.permute.xlu1 %1326  ;;  %2047 = vmatmul.mubr.msk.f32.vlgmr.msra.gmra.mrb[2].mxu1 %vm275_vm2, %v2041_v56  ;;  %v1145_v58 = vpop.permute.xlu0 %1144 }
  0xb9   : > { %v1155_v59 = vsel %vm1154_vm6, %v1145_v58, %v1147_v50  ;;  %1485 = vmatprep.mubr.f32.mxu1 %v2189_v0  ;;  %v1844_v58 = vsub.s32 5, %v759_v30 }
  0xba   : > { %2043 = vmatpush1.msk.msra.mxu0 %vm279_vm1, %v1155_v59  ;;  %v1848_v59 = vsub.s32 7, %v759_v30 }
  0xbb   : > { %2044 = vmatmul.mubr.msk.f32.vlgmr.msra.gmra.mrb[2].mxu0 %vm275_vm2, %v2041_v56  ;;  %v1836_v56 = vsub.s32 1, %v759_v30 }
  0xbc   : > { %v1331_v60 = vpop.permute.xlu1 %1330  ;;  %v1329_v61 = vpop.permute.xlu0 %1328  ;;  %1414 = vmatprep.mubr.f32.mxu0 %v2189_v0 }
  0xbd   : > { %v1336_v62 = vsel %vm1334_vm7, %v1327_v57, %v1329_v61  ;;  %v1337_v5 = vsel %vm1334_vm7, %v1329_v61, %v1331_v60 }
  0xbe   : > { %2050 = vmatprep.subr.msk.mxu0 %vm279_vm1, %v1336_v62  ;;  %v1845_v62 = vrot.slane %v251_v32, %v1844_v58 }
  0xc0   : > { %v1325_v63 = vpop.permute.xlu1 %1324  ;;  %v1333_v1 = vpop.permute.xlu0 %1332 }
  0xc1   : > { %v1335_v3 = vsel %vm1334_vm7, %v1325_v63, %v1327_v57  ;;  %v1338_v4 = vsel %vm1334_vm7, %v1331_v60, %v1333_v1  ;;  %v1840_v57 = vsub.s32 3, %v759_v30  ;;  %v1837_v60 = vrot.slane %v251_v32, %v1836_v56 }
  0xc2   : > { %2051 = vmatpush1.msk.msra.mxu0 %vm279_vm1, %v1335_v3  ;;  %2053 = vmatprep.subr.msk.mxu1 %vm279_vm1, %v1338_v4  ;;  %v1849_v63 = vrot.slane %v251_v32, %v1848_v59  ;;  %v1865_v3 = vrot.slane %v1845_v62, %v1836_v56 }
  0xc3   : > { %2054 = vmatpush1.msk.msra.mxu1 %vm279_vm1, %v1337_v5  ;;  %2052 = vmatmul.mubr.msk.f32.vlgmr.msra.gmra.mrb[4].mxu0 %vm275_vm2, %v2049_v2  ;;  %v1841_v61 = vrot.slane %v251_v32, %v1840_v57  ;;  %v1857_v1 = vrot.slane %v1837_v60, %v1836_v56 }
  0xc4   : > { %v1497_v6 = vpop.permute.xlu1 %1496  ;;  %v1495_v7 = vpop.permute.xlu0 %1494  ;;  %2055 = vmatmul.mubr.msk.f32.vlgmr.msra.gmra.mrb[4].mxu1 %vm275_vm2, %v2049_v2  ;;  %1582 = vmatprep.mubr.f32.mxu0 %v2189_v0  ;;  %v1869_v4 = vrot.slane %v1849_v63, %v1836_v56 }
  0xc5   : > { %v1504_v8 = vsel %vm1502_vm8, %v1495_v7, %v1497_v6  ;;  %1653 = vmatprep.mubr.f32.mxu1 %v2189_v0  ;;  %v1861_v2 = vrot.slane %v1841_v61, %v1836_v56 }
  0xc6   : > { %2056 = vmatprep.subr.msk.mxu0 %vm279_vm1, %v1504_v8 }
  0xc8   : > { %v1501_v9 = vpop.permute.xlu1 %1500  ;;  %v1499_v10 = vpop.permute.xlu0 %1498 }
  0xc9   : > { %v1505_v11 = vsel %vm1502_vm8, %v1497_v6, %v1499_v10  ;;  %v1506_v12 = vsel %vm1502_vm8, %v1499_v10, %v1501_v9 }
  0xca   : > { %2059 = vmatprep.subr.msk.mxu1 %vm279_vm1, %v1506_v12 }
  0xcb   : > { %2060 = vmatpush1.msk.msra.mxu1 %vm279_vm1, %v1505_v11 }
  0xcc   : > { %v1665_v14 = vpop.permute.xlu1 %1664  ;;  %v1493_v15 = vpop.permute.xlu0 %1492  ;;  %2061 = vmatmul.mubr.msk.f32.vlgmr.msra.gmra.mrb[4].mxu1 %vm275_vm2, %v2048_v13 }
  0xcd   : > { %v1503_v16 = vsel %vm1502_vm8, %v1493_v15, %v1495_v7  ;;  %1823 = vmatprep.mubr.f32.mxu1 %v2189_v0 }
  0xce   : > { %2057 = vmatpush1.msk.msra.mxu0 %vm279_vm1, %v1503_v16 }
  0xcf   : > { %2058 = vmatmul.mubr.msk.f32.vlgmr.msra.gmra.mrb[4].mxu0 %vm275_vm2, %v2048_v13 }
  0xd0   : > { %v1669_v17 = vpop.permute.xlu1 %1668  ;;  %v1667_v18 = vpop.permute.xlu0 %1666  ;;  %1752 = vmatprep.mubr.f32.mxu0 %v2189_v0 }
  0xd1   : > { %v1674_v19 = vsel %vm1672_vm9, %v1665_v14, %v1667_v18  ;;  %v1675_v25 = vsel %vm1672_vm9, %v1667_v18, %v1669_v17 }
  0xd2   : > { %2063 = vmatprep.subr.msk.mxu0 %vm279_vm1, %v1674_v19 }
  0xd4   : > { %v1663_v20 = vpop.permute.xlu1 %1662  ;;  %v1671_v21 = vpop.permute.xlu0 %1670 }
  0xd5   : > { %v1673_v23 = vsel %vm1672_vm9, %v1663_v20, %v1665_v14  ;;  %v1676_v24 = vsel %vm1672_vm9, %v1669_v17, %v1671_v21 }
  0xd6   : > { %2064 = vmatpush1.msk.msra.mxu0 %vm279_vm1, %v1673_v23  ;;  %2066 = vmatprep.subr.msk.mxu1 %vm279_vm1, %v1676_v24 }
  0xd7   : > { %2065 = vmatmul.mubr.msk.f32.vlgmr.msra.gmra.mrb[4].mxu0 %vm275_vm2, %v2062_v22  ;;  %2067 = vmatpush1.msk.msra.mxu1 %vm279_vm1, %v1675_v25 }
  0xd8   : > { %2068 = vmatmul.mubr.msk.f32.vlgmr.msra.gmra.mrb[4].mxu1 %vm275_vm2, %v2062_v22 }
  0xe5   : > { %v1882_v12 = vpop.permute.xlu0 %1881 }
 0x173   : > { %v748_v0 = vpop.f32.mrb[0].mxu1 }
 0x174   : > { %v750_v26 = vpop.f32.mrb[1].mxu1  ;;  %v796_v43 = vmul.f32 %v789_v39, %v748_v0 }
 0x175   : > { %v797_v45 = vmul.f32 %v793_v41, %v750_v26 }
 0x177   : > { %v677_v28 = vpop.f32.mrb[0].mxu0 }
 0x178   : > { %v679_v29 = vpop.f32.mrb[1].mxu0  ;;  %v794_v49 = vmul.f32 %v781_v42, %v677_v28 }
 0x179   : > { %v795_v51 = vmul.f32 %v785_v44, %v679_v29 }
 0x18b   : > { %v1307_v46 = vpop.f32.mrb[2].mxu1 }
 0x18c   : > { %v1318_v47 = vadd.f32 %v1307_v46, %v796_v43  ;;  %v1309_v48 = vpop.f32.mrb[3].mxu1 }
 0x18d   : > { %v1319_v50 = vadd.f32 %v1309_v48, %v797_v45 }
 0x18e   : > { %v1236_v52 = vpop.f32.mrb[2].mxu0 }
 0x18f   : > { %v1316_v53 = vadd.f32 %v1236_v52, %v794_v49  ;;  %v1238_v54 = vpop.f32.mrb[3].mxu0 }
 0x190   : > { %v1317_v55 = vadd.f32 %v1238_v54, %v795_v51 }
 0x1aa   : > { %v1754_v5 = vpop.f32.mrb[4].mxu0 }
 0x1ab   : > { %v1870_v6 = vmul.f32 %v1857_v1, %v1754_v5  ;;  %v1756_v7 = vpop.f32.mrb[5].mxu0  ;;  %v1825_v8 = vpop.f32.mrb[4].mxu1 }
 0x1ac   : > { %v1871_v9 = vmul.f32 %v1861_v2, %v1756_v7  ;;  %v1872_v10 = vmul.f32 %v1865_v3, %v1825_v8  ;;  %v1827_v11 = vpop.f32.mrb[5].mxu1 }
 0x1ad   : > { %v1874_v13 = vadd.f32 %v1870_v6, %v1316_v53  ;;  %v1873_v14 = vmul.f32 %v1869_v4, %v1827_v11 }
 0x1ae   : > { %v1875_v15 = vadd.f32 %v1871_v9, %v1317_v55  ;;  %v1876_v16 = vadd.f32 %v1872_v10, %v1318_v47 }
 0x1af   : > { %v1877_v17 = vadd.f32 %v1873_v14, %v1319_v50  ;;  %v1884_v18 = vadd.f32 %v1882_v12, %v1874_v13 }
 0x1b0   : > { %v1885_v19 = vadd.f32 %v1882_v12, %v1875_v15  ;;  %v1886_v20 = vadd.f32 %v1882_v12, %v1876_v16 }
 0x1b1   : > { %v1887_v21 = vadd.f32 %v1882_v12, %v1877_v17  ;;  %v1888_v22 = vmax.f32 %v1884_v18, 0.0 }
 0x1b2   : > { %v1889_v23 = vmax.f32 %v1885_v19, 0.0  ;;  %v1890_v24 = vmax.f32 %v1886_v20, 0.0 }
 0x1b3   : > { %v1891_v25 = vmax.f32 %v1887_v21, 0.0  ;;  %1892 = vst [vmem:[%s241_s28] sm:$0xff] %v1888_v22 }
 0x1b4   : > { %1893 = vst [vmem:[%s241_s28 + $0x8] sm:$0xff] %v1889_v23  ;;  %1894 = vst [vmem:[%s241_s28 + $0x10] sm:$0xff] %v1890_v24 }
 0x1b5   : > { %1895 = vst [vmem:[%s241_s28 + $0x18] sm:$0xff] %v1891_v25 }
 0x1b6 PF: > { %s14_s19 = sadd.s32 1, %s2187_s19   ;;  %s2461_s15 = smov %s2179_s17 }
 0x1b7   : > { %p11_p7 = scmp.ge.s32.totalorder %s14_s19, 6   ;;  %s2462_s16 = smov %s2183_s18 }
 0x1b8   : > { %s2463_s17 = smov %s2466_s20  ;;  %s2464_s18 = smov %s2470_s21 }
 0x1b9   :  { %13 = sbr.rel (!%p11_p7) target bundleno = 3 (0x3), region = 78 }

</bundles_post_ra>
